<compile_context>
chip_gen: v7x
topology: tpu7x:2x2x1
jax: 0.10.0
libtpu: 0.0.40
codegen_flags: <defaults>
</compile_context>

<pallas_src>
import math

import jax
import jax.numpy as jnp
from jax.experimental import pallas as pl
from jax.experimental.pallas import tpu as pltpu


# ----------------------------------------------------------------------------
# Kernels (pure VPU math; the op is HBM-bound, so all the work is in tiling).
# ----------------------------------------------------------------------------
def _drop_path_kernel(scale_ref, x_ref, o_ref):
    # scale_ref: (TB, 1) f32; x_ref/o_ref: (TB, TF).
    o_ref[...] = (x_ref[...] * scale_ref[...]).astype(o_ref.dtype)


def _drop_path_add_kernel(scale_ref, x_ref, res_ref, o_ref):
    # Fused residual add: o = res + x * scale.
    o_ref[...] = (res_ref[...] + x_ref[...] * scale_ref[...]).astype(o_ref.dtype)


# ----------------------------------------------------------------------------
# Tiling helpers.
# ----------------------------------------------------------------------------
def _round_up(n, m):
    return -(-n // m) * m


def _native_sublanes(dtype):
    """Packed sublanes per vreg row group: 8 (f32), 16 (bf16/f16), 32 (int8/fp8)."""
    itemsize = jnp.dtype(dtype).itemsize
    return max(8, (4 // max(1, itemsize)) * 8)


def _budgets(n_streams):
    """Generation-aware (target_block_bytes, vmem_limit_bytes)."""
    try:
        cap = pltpu.get_tpu_info().vmem_capacity_bytes
    except Exception:
        cap = 128 * 1024 * 1024
    if cap <= 64 * 1024 * 1024:
        # v7x: 64 MiB VMEM per TensorCore -> smaller blocks + scoped limit.
        block, limit = 4 * 1024 * 1024, 32 * 1024 * 1024
    else:
        # v5e / v6e: 128 MiB physical VMEM.
        block, limit = 8 * 1024 * 1024, 64 * 1024 * 1024
    # Keep the double-buffered footprint (2 * n_streams * block) under limit.
    block = min(block, limit // (2 * n_streams))
    return block, limit


def _fold_factor(B, F, sub):
    """If B under-fills the sublanes and F is large, fold features into
    sublanes: (B, F) -> (B*s, F//s).  Pure layout plumbing, no extra compute."""
    if B >= sub or F < 256:
        return 1
    for s in range(max(1, sub // B), 1, -1):
        if F % s == 0 and (F // s) % 128 == 0:
            return s
    return 1


def _choose_tiles(B, F, dtype, target_block_bytes):
    """Pick (TB, TF): dtype-aware sublane tiling, lane-dense feature tiling."""
    itemsize = jnp.dtype(dtype).itemsize
    sub = _native_sublanes(dtype)

    if F <= 128:
        # Full-extent last dim is always legal (only hit when the caller
        # forces the Pallas path on a narrow tensor).
        tf = F
        if B <= sub:
            tb = B
        else:
            tb_cap = max(sub, (target_block_bytes // (tf * itemsize)) // sub * sub)
            tb = min(_round_up(B, sub), tb_cap)
        return tb, tf

    # Batch (sublane) tile first, rounded to the dtype-native packing.
    tb = B if B <= sub else sub
    # Feature (lane) tile derived from the *actual* tb (review fix): multiple
    # of 128, capped near the block-byte budget.
    tf_cap = max(128, (target_block_bytes // (tb * itemsize)) // 128 * 128)
    tf = min(_round_up(F, 128), tf_cap)
    # If all features fit in one lane tile, grow tb (multiples of sub) to fill
    # the byte budget and amortize the ~0.35 us per-step overhead.
    if B > tb and tf >= _round_up(F, 128):
        tb_cap = max(sub, (target_block_bytes // (tf * itemsize)) // sub * sub)
        tb = min(_round_up(B, sub), tb_cap)
    return tb, tf


def _ensure_two_grid_steps(B, F, tb, tf, sub, total_bytes):
    """Guarantee >= 2 grid steps for non-tiny tensors so v7x's second
    TensorCore gets work under dimension_semantics=('parallel','parallel')."""
    if total_bytes < 2 * 1024 * 1024:
        return tb, tf
    if pl.cdiv(B, tb) * pl.cdiv(F, tf) >= 2:
        return tb, tf
    if B > sub:  # prefer splitting batch: keeps the scale block resident
        tb = max(sub, _round_up(pl.cdiv(B, 2), sub))
        if pl.cdiv(B, tb) >= 2:
            return tb, tf
    if F > 128:
        tf = max(128, _round_up(pl.cdiv(F, 2), 128))
    return tb, tf


# ----------------------------------------------------------------------------
# Launch path shared by drop_path / drop_path_add.
# ----------------------------------------------------------------------------
def _scale_vector(key, B, keep_prob, scale_by_keep):
    keep = jax.random.bernoulli(key, p=keep_prob, shape=(B,))
    gain = (1.0 / keep_prob) if (scale_by_keep and keep_prob > 0.0) else 1.0
    return (keep.astype(jnp.float32) * jnp.float32(gain)).reshape(B, 1)


def _run(kernel, scale, arrays, out_dtype, min_pallas_bytes):
    """arrays: list of (B, F) tensors streamed alongside the per-sample scale."""
    B, F = arrays[0].shape
    itemsize = jnp.dtype(out_dtype).itemsize
    total_bytes = B * F * itemsize

    # Small-tensor / narrow-feature fallback: launch + per-step overhead and
    # lane-masked stores (F < 128) dominate; XLA fuses the tiny multiply free.
    if F < 128 or total_bytes < min_pallas_bytes:
        if len(arrays) == 1:
            return (arrays[0] * scale).astype(out_dtype)
        return (arrays[1] + arrays[0] * scale).astype(out_dtype)

    sub = _native_sublanes(out_dtype)

    # Tiny batch: fold features into sublanes so tiles fill all 8/16/32 rows.
    s = _fold_factor(B, F, sub)
    if s > 1:
        arrays = [a.reshape(B * s, F // s) for a in arrays]
        scale = jnp.repeat(scale, s, axis=0)
        B, F = B * s, F // s

    n_streams = len(arrays) + 1  # HBM streams: inputs + output
    block_bytes, vmem_limit = _budgets(n_streams)
    tb, tf = _choose_tiles(B, F, out_dtype, block_bytes)
    tb, tf = _ensure_two_grid_steps(B, F, tb, tf, sub, total_bytes)

    # Batch-outer / feature-inner: the (tb, 1) scale block index is constant
    # across the inner axis so its DMA is not re-issued.  Do NOT swap axes.
    grid = (pl.cdiv(B, tb), pl.cdiv(F, tf))

    tile_spec = pl.BlockSpec((tb, tf), lambda i, j: (i, j))
    out = pl.pallas_call(
        kernel,
        out_shape=jax.ShapeDtypeStruct((B, F), out_dtype),
        grid=grid,
        in_specs=[pl.BlockSpec((tb, 1), lambda i, j: (i, 0))]
                 + [tile_spec] * len(arrays),
        out_specs=tile_spec,
        compiler_params=pltpu.CompilerParams(
            dimension_semantics=("parallel", "parallel"),
            vmem_limit_bytes=vmem_limit,
        ),
    )(scale, *arrays)

    if s > 1:
        out = out.reshape(B // s, F * s)
    return out


# ----------------------------------------------------------------------------
# Public API (matches the PyTorch module's forward semantics).
# ----------------------------------------------------------------------------
def drop_path(x, key, drop_prob: float = 0.0, training: bool = False,
              scale_by_keep: bool = True, min_pallas_bytes: int = 1 << 20):
    """Pallas equivalent of timm-style drop_path; x has shape (B, ...)."""
    if drop_prob == 0.0 or not training:
        return x
    if key is None:
        raise ValueError("drop_path requires an explicit PRNG key when "
                         "training with drop_prob > 0 (stochastic depth must "
                         "differ across layers / steps).")
    keep_prob = 1.0 - drop_prob
    B = x.shape[0]
    F = int(math.prod(x.shape[1:])) if x.ndim > 1 else 1

    scale = _scale_vector(key, B, keep_prob, scale_by_keep)
    out2d = _run(_drop_path_kernel, scale, [x.reshape(B, F)], x.dtype,
                 min_pallas_bytes)
    return out2d.reshape(x.shape)


def drop_path_add(x, residual, key, drop_prob: float = 0.0,
                  training: bool = False, scale_by_keep: bool = True,
                  min_pallas_bytes: int = 1 << 20):
    """Fused residual + drop_path(x): one HBM pass instead of two."""
    if drop_prob == 0.0 or not training:
        return residual + x
    if key is None:
        raise ValueError("drop_path_add requires an explicit PRNG key when "
                         "training with drop_prob > 0.")
    keep_prob = 1.0 - drop_prob
    B = x.shape[0]
    F = int(math.prod(x.shape[1:])) if x.ndim > 1 else 1

    scale = _scale_vector(key, B, keep_prob, scale_by_keep)
    out_dtype = jnp.result_type(x.dtype, residual.dtype)
    out2d = _run(_drop_path_add_kernel, scale,
                 [x.reshape(B, F), residual.reshape(B, F)],
                 out_dtype, min_pallas_bytes)
    return out2d.reshape(x.shape)


class DropPath:
    """Drop paths (Stochastic Depth) per sample (main path of residual blocks)."""

    def __init__(self, drop_prob: float = 0.0, scale_by_keep: bool = True,
                 min_pallas_bytes: int = 1 << 20):
        self.drop_prob = drop_prob
        self.scale_by_keep = scale_by_keep
        self.min_pallas_bytes = min_pallas_bytes
        self.training = True

    def __call__(self, x, key=None):
        return drop_path(x, key, self.drop_prob, self.training,
                         self.scale_by_keep, self.min_pallas_bytes)

    def extra_repr(self):
        return f"drop_prob={round(self.drop_prob, 3):0.3f}"


if __name__ == "__main__":
    root = jax.random.PRNGKey(0)
    data_key, res_key, mask_key = jax.random.split(root, 3)

    # Shapes consistent with a point-cloud encoder block: (batch, tokens, dim).
    B, N, D = 2, 8, 32
    x = jax.random.normal(data_key, (B, N, D), dtype=jnp.float32)
    residual = jax.random.normal(res_key, (B, N, D), dtype=jnp.float32)

    drop_prob = 0.5
    keep_prob = 1.0 - drop_prob

    # Force the Pallas path even at this tiny shape (min_pallas_bytes=0).
    mod = DropPath(drop_prob=drop_prob, scale_by_keep=True, min_pallas_bytes=0)
    mod.training = True
    y = jax.block_until_ready(mod(x, key=mask_key))

    # Exact reference: same Bernoulli draw computed outside the kernel.
    keep_ref = jax.random.bernoulli(mask_key, p=keep_prob, shape=(B,))
    scale_ref = (keep_ref.astype(jnp.float32) / keep_prob).reshape(B, 1, 1)
    ref = x * scale_ref
    assert bool(jnp.allclose(y, ref, rtol=1e-6, atol=1e-6)), "drop_path mismatch"

    # Per-sample semantics: each sample is either all-zero or x / keep_prob.
    for b in range(B):
        zeroed = bool(jnp.allclose(y[b], 0.0))
        scaled = bool(jnp.allclose(y[b], x[b] / keep_prob, rtol=1e-5, atol=1e-5))
        assert zeroed or scaled, "per-sample mask semantics violated"

    # Fused residual variant matches residual + drop_path(x).
    y_fused = jax.block_until_ready(
        drop_path_add(x, residual, mask_key, drop_prob, True, True,
                      min_pallas_bytes=0))
    assert bool(jnp.allclose(y_fused, residual + ref, rtol=1e-6, atol=1e-6)), \
        "fused drop_path_add mismatch"

    # Eval mode (or drop_prob == 0): identity pass-through, no key needed.
    mod.training = False
    y_eval = jax.block_until_ready(mod(x))
    assert bool(jnp.array_equal(y_eval, x))

    print("KERNEL_OK")
</pallas_src>

<mosaic_0001>
module attributes {stable_mosaic.version = 11 : i64} {
  func.func @_drop_path_kernel(%arg0: i32, %arg1: i32, %arg2: memref<4x1xf32, #tpu.memory_space<vmem>>, %arg3: memref<4x128xf32, #tpu.memory_space<vmem>>, %arg4: memref<4x128xf32, #tpu.memory_space<vmem>>) attributes {dimension_semantics = [#tpu.dimension_semantics<parallel>, #tpu.dimension_semantics<parallel>], iteration_bounds = array<i64: 1, 1>, scalar_prefetch = 0 : i64, scratch_operands = 0 : i64, tpu.core_type = #tpu.core_type<tc>, window_params = [{transform_indices = @transform_0, window_bounds = array<i64: 4, 1>}, {transform_indices = @transform_1, window_bounds = array<i64: 4, 128>}, {transform_indices = @transform_2, window_bounds = array<i64: 4, 128>}]} {
    %c0 = arith.constant 0 : index
    %c0_0 = arith.constant 0 : index
    %0 = vector.load %arg3[%c0, %c0_0] : memref<4x128xf32, #tpu.memory_space<vmem>>, vector<4x128xf32>
    %c0_1 = arith.constant 0 : index
    %c0_2 = arith.constant 0 : index
    %1 = vector.load %arg2[%c0_1, %c0_2] : memref<4x1xf32, #tpu.memory_space<vmem>>, vector<4x1xf32>
    %2 = vector.broadcast %1 : vector<4x1xf32> to vector<4x128xf32>
    %3 = arith.mulf %0, %2 : vector<4x128xf32>
    %c0_3 = arith.constant 0 : index
    %c0_4 = arith.constant 0 : index
    %4 = vector.load %arg4[%c0_3, %c0_4] : memref<4x128xf32, #tpu.memory_space<vmem>>, vector<4x128xf32>
    tpu.vector_store %arg4[%c0_3, %c0_4], %3 {strides = array<i32>} : memref<4x128xf32, #tpu.memory_space<vmem>>, vector<4x128xf32>,
    return
  }
  func.func @transform_0(%arg0: i32, %arg1: i32) -> (i32, i32) {
    %c0_i32 = arith.constant 0 : i32
    %c0_i32_0 = arith.constant 0 : i32
    return %arg0, %c0_i32 : i32, i32
  }
  func.func @transform_1(%arg0: i32, %arg1: i32) -> (i32, i32) {
    %c0_i32 = arith.constant 0 : i32
    return %arg0, %arg1 : i32, i32
  }
  func.func @transform_2(%arg0: i32, %arg1: i32) -> (i32, i32) {
    %c0_i32 = arith.constant 0 : i32
    return %arg0, %arg1 : i32, i32
  }
}

</mosaic_0001>

<bundles_post_ra>
// kernel: tpu_custom_call.1
= control target key start
LH: loop header
LB: loop body
LE: loop exit
PB: predicated region body
PF: predicated region fallthrough
CT: control target
= control target key end

     0   :  { %7 = vsyncpa [#allocation3], 0  ;;  %s193_s0 = inlined_call_operand.hbm [shape: f32[4,1], index: 0, kind: input, shape index: {}]   ;;  %s194_s1 = inlined_call_operand.hbm [shape: f32[4,128], index: 1, kind: input, shape index: {}]   ;;  %s195_s2 = inlined_call_operand.hbm [shape: f32[4,128], index: 2, kind: output, shape index: {}]  }
   0x1   :  { %8 = vsyncpa [#allocation6], 0 }
   0x2   :  { %9 = vsyncpa [#allocation4], 0  ;;  %s138_s9 = smov [#allocation2]   ;;  %s139_s11 = smov [#allocation5]  }
   0x3   :  { %s16_s10 = sshll.u32 %s138_s9, 4  ;;  %s26_s12 = sshll.u32 %s139_s11, 4  ;;  %s17_s10 = int_to_ptr.vmem [resolvable:$true] %s16_s10  ;;  %s27_s12 = int_to_ptr.vmem [resolvable:$true] %s26_s12 }
   0x4   :  { %s66_s15 = scalar_lea.hbm %s193_s0, 64 }
   0x5   :  { %p67_p0 = scmp.ne.s32.totalorder %s193_s0, %s66_s15  ;;  %p70_p1 = scmp.lt.u32.totalorder %s66_s15, %s193_s0 }
   0x7   :  { %p72_p2 = pnand %p70_p1, %p67_p0 }
   0x9   :  { %75 = shalt.err (!%p72_p2)
}
   0xa   :  { %s76_s20 = scalar_lea.vmem %s17_s10, 64  ;;  %p81_p4 = scmp.lt.s32.totalorder %s17_s10, %s17_s10 }
   0xb   :  { %p77_p3 = scmp.ne.s32.totalorder %s17_s10, %s76_s20  ;;  %p82_p5 = scmp.lt.s32.totalorder %s76_s20, %s76_s20 }
   0xd   :  { %p83_p6 = por %p82_p5, %p81_p4 }
   0xf   :  { %p84_p7 = pnand %p83_p6, %p77_p3 }
  0x11   :  { %87 = shalt.err (!%p84_p7)
}
  0x12   :  { %19 = dma.hbm_to_vmem [thread:$0]  %s193_s0, 64, %s17_s10, [#allocation3]  }
  0x13   :  { %s88_s25 = scalar_lea.hbm %s194_s1, 64 }
  0x14   :  { %p89_p8 = scmp.ne.s32.totalorder %s194_s1, %s88_s25  ;;  %p92_p9 = scmp.lt.u32.totalorder %s88_s25, %s194_s1 }
  0x16   :  { %p94_p10 = pnand %p92_p9, %p89_p8 }
  0x18   :  { %97 = shalt.err (!%p94_p10)
}
  0x19   :  { %s98_s30 = scalar_lea.vmem %s27_s12, 64  ;;  %p103_p12 = scmp.lt.s32.totalorder %s27_s12, %s27_s12 }
  0x1a   :  { %p99_p11 = scmp.ne.s32.totalorder %s27_s12, %s98_s30  ;;  %p104_p13 = scmp.lt.s32.totalorder %s98_s30, %s98_s30 }
  0x1c   :  { %p105_p0 = por %p104_p13, %p103_p12 }
  0x1e   :  { %p106_p1 = pnand %p105_p0, %p99_p11 }
  0x20   :  { %109 = shalt.err (!%p106_p1)
}
  0x21   :  { %29 = dma.hbm_to_vmem [thread:$0]  %s194_s1, 64, %s27_s12, [#allocation6]  }
  0x22   :  { %132 = dma.done.wait [#allocation3], 64  }
  0x23   :  { %133 = vsyncadd [#allocation3], 4294967232 }
  0x24   :  { %134 = dma.done.wait [#allocation6], 64  }
  0x25   :  { %135 = vsyncadd [#allocation6], 4294967232  ;;  %v140_v0 = vmov 0   ;;  %v37_v1 = vld [vmem:[#allocation2] sm:$0xf]  ;;  %s141_s4 = smov [#allocation7]  }
  0x26   :  { %65 = vset.pattern.permute.xlu0 %v140_v0  ;;  %v36_v2 = vld [vmem:[#allocation5] sm:$0xf]  ;;  %s51_s5 = sshll.u32 %s141_s4, 4  ;;  %s52_s5 = int_to_ptr.vmem [resolvable:$true] %s51_s5 }
  0x27   :  { %40 = vperm.xlu0 %65, %v37_v1   ;;  %s110_s6 = scalar_lea.vmem %s52_s5, 64  ;;  %p115_p3 = scmp.lt.s32.totalorder %s52_s5, %s52_s5 }
  0x28   :  { %p111_p2 = scmp.ne.s32.totalorder %s52_s5, %s110_s6  ;;  %p116_p4 = scmp.lt.s32.totalorder %s110_s6, %s110_s6 }
  0x2a   :  { %p117_p5 = por %p116_p4, %p115_p3 }
  0x2c   :  { %p118_p6 = pnand %p117_p5, %p111_p2 }
  0xa6   :  { %v41_v3 = vpop.permute.xlu0 %40 }
  0xa7   :  { %v43_v4 = vmul.f32 %v41_v3, %v36_v2 }
  0xa9   :  { %44 = vst [vmem:[#allocation7] sm:$0xf] %v43_v4 }
  0xaa   :  { %121 = shalt.err (!%p118_p6)
}
  0xab   :  { %s122_s8 = scalar_lea.hbm %s195_s2, 64 }
  0xac   :  { %p123_p7 = scmp.ne.s32.totalorder %s195_s2, %s122_s8  ;;  %p126_p8 = scmp.lt.u32.totalorder %s122_s8, %s195_s2 }
  0xae   :  { %p128_p9 = pnand %p126_p8, %p123_p7 }
  0xb0   :  { %131 = shalt.err (!%p128_p9)
}
  0xb1   :  { %54 = dma.vmem_to_hbm [thread:$0]  %s52_s5, 64, %s195_s2, [#allocation4]  }
  0xb2   :  { %136 = dma.done.wait [#allocation4], 64  }
  0xb3   :  { %137 = vsyncadd [#allocation4], 4294967232 }
  0xb4   :  { %58 = vsyncpa [#allocation3], 1 }
  0xb5   :  { %59 = vsyncpa [#allocation6], 1 }
  0xb6   :  { %60 = vsyncpa [#allocation4], 1 }

</bundles_post_ra>
